<compile_context>
chip_gen: v5e
topology: v5e:2x2
jax: 0.10.0
libtpu: 0.0.40
codegen_flags: <defaults>
</compile_context>

<pallas_src>
import jax
import jax.numpy as jnp
from jax.experimental import pallas as pl
from jax.experimental.pallas import tpu as pltpu


# ----------------------------------------------------------------------------
# Module configuration (mirrors the PyTorch SemanticModule)
# ----------------------------------------------------------------------------
IN_CHANNELS = 6
C_PAD = 128                      # lane-dense OUTPUT channel padding only
HEAD_CONVS = ('connected_to_sum', 'ordered_next_sum')
LAYER_CONVS = (
    ('connected_to_sum', 'ordered_next_sum'),
    ('represents_sum', 'represented_by_sum', 'neighboring_vertical_mean',
     'neighboring_horizontal_mean', 'contains_sum', 'order_add',
     'perpendicular_mean'),
    ('represents_sum', 'represented_by_sum', 'neighboring_vertical_mean',
     'neighboring_horizontal_mean', 'contains_sum', 'order_add',
     'perpendicular_mean'),
)
HEAD_DIMS = (IN_CHANNELS, 16)
LAYER_DIMS = ((16, 32), (32, 64), (64, 64))
NODE_TYPE = 'stroke'


# ----------------------------------------------------------------------------
# Tiling / VMEM planning
# ----------------------------------------------------------------------------
def _round_up(n, m):
    return ((n + m - 1) // m) * m


def _largest_tile(n_pad, target):
    """Largest multiple of 128 <= target that divides n_pad (n_pad % 128 == 0)."""
    t = max(128, min((target // 128) * 128, n_pad))
    while n_pad % t:
        t -= 128
    return t


def _plan_tiles(n):
    """Padded node count and (tm, tk) tiles for the dense per-relation SpMM."""
    if n <= 256:
        # Single-tile regime; pad to the int8 sublane packing (32).
        n_pad = max(_round_up(n, 32), 32)
        return n_pad, n_pad, n_pad
    n_pad = _round_up(n, 256)
    # tm <= n_pad // 2 keeps >= 2 row tiles so the "parallel" axis actually
    # splits across v7x's two TensorCores.
    tm = _largest_tile(n_pad, min(512, n_pad // 2))
    tk = _largest_tile(n_pad, 2048)
    return n_pad, tm, tk


def _vmem_limit_bytes():
    """Generation-aware VMEM budget (64 MiB/TC on v7x, 128 MiB on v5e/v6e)."""
    try:
        info = pltpu.get_tpu_info()
        cap = int(getattr(info, 'vmem_capacity_bytes', 0))
    except Exception:
        cap = 0
    if cap <= 0:
        return 32 * 1024 * 1024        # conservative fallback, fits everywhere
    return int(min(cap * 3 // 4, 100 * 1024 * 1024))


# ----------------------------------------------------------------------------
# Pallas kernel
# ----------------------------------------------------------------------------
def _make_hetero_conv_kernel(use_residual, use_proj, apply_relu, slice_x, tk):
    """Per-layer kernel; flags baked in at trace time (one compile per layer)."""

    def kernel(a_ref, x_ref, w_ref, deg_ref, *rest):
        # rest = ([xres_ref], [proj_ref], o_ref, ax_ref)
        idx = 0
        xres_ref = proj_ref = None
        if use_residual:
            xres_ref = rest[idx]; idx += 1
            if use_proj:
                proj_ref = rest[idx]; idx += 1
        o_ref = rest[idx]
        ax_ref = rest[idx + 1]

        r = pl.program_id(1)
        k = pl.program_id(2)
        nr = pl.num_programs(1)
        nk = pl.num_programs(2)

        # Output block is resident across the (relation, K) reduction axes.
        @pl.when(jnp.logical_and(r == 0, k == 0))
        def _():
            o_ref[...] = jnp.zeros_like(o_ref)

        # Per-relation A@X accumulator over the K (source node) axis.
        @pl.when(k == 0)
        def _():
            ax_ref[...] = jnp.zeros_like(ax_ref)

        # A is int8 edge counts in HBM; upcast to bf16 on the VPU (hidden
        # under the A DMA) and contract over source nodes on the MXU.
        a_blk = a_ref[0].astype(jnp.bfloat16)
        if slice_x:
            start = pl.multiple_of(k * tk, 128)
            x_blk = x_ref[pl.ds(start, tk), :]      # X is VMEM-resident
        else:
            x_blk = x_ref[...]
        ax_ref[...] += jnp.dot(a_blk, x_blk, preferred_element_type=jnp.float32)

        @pl.when(k == nk - 1)
        def _():
            # 'mean' normalization as an exact f32 per-row scale (deg_inv == 1
            # for sum/add relations), then the small per-relation weight
            # matmul (the whole weight stack is resident; index by relation).
            contrib = jnp.dot(ax_ref[...] * deg_ref[0], w_ref[r],
                              preferred_element_type=jnp.float32)

            @pl.when(r != nr - 1)
            def _():
                o_ref[...] += contrib

            # Final relation: fold residual (optionally projected) + ReLU and
            # store the output tile exactly once.
            @pl.when(r == nr - 1)
            def _():
                out = o_ref[...] + contrib
                if use_residual:
                    res = xres_ref[...]
                    if use_proj:
                        res = jnp.dot(res, proj_ref[...],
                                      preferred_element_type=jnp.float32)
                    out = out + res
                if apply_relu:
                    out = jnp.maximum(out, 0.0)
                o_ref[...] = out

    return kernel


def hetero_conv(adj, deg_inv, x, w, tm, tk, x_res=None, proj=None,
                apply_relu=False, vmem_limit=32 * 1024 * 1024):
    """One (residual) hetero-conv layer.

    adj:     [R, N, N]      int8, unnormalized edge counts (N tile-padded)
    deg_inv: [R, N, 1]      f32, per-row scale (1/deg for 'mean', 1 otherwise)
    x:       [N, Cin]       bf16 message-path features (real, unpadded Cin)
    w:       [R, Cin, 128]  f32 weights, output lanes padded to 128
    x_res:   [N, Cres]      f32 residual features (None -> no residual)
    proj:    [Cres, 128]    f32 residual projection (None -> identity skip;
                            in that case Cres must already be 128)
    """
    R, N, _ = adj.shape
    Cin = x.shape[1]
    Cout = w.shape[2]
    assert N % tm == 0 and N % tk == 0

    grid = (N // tm, R, N // tk)

    # Keep X resident in VMEM (DMA'd once) unless it would eat the budget.
    x_resident = (2 * N * Cin * x.dtype.itemsize) <= vmem_limit // 4
    slice_x = x_resident and (N // tk > 1)

    in_arrays = [adj, x, w, deg_inv]
    in_specs = [
        pl.BlockSpec((1, tm, tk), lambda m, r, k: (r, m, k)),
        (pl.BlockSpec((N, Cin), lambda m, r, k: (0, 0)) if x_resident
         else pl.BlockSpec((tk, Cin), lambda m, r, k: (k, 0))),
        pl.BlockSpec((R, Cin, Cout), lambda m, r, k: (0, 0, 0)),  # resident W
        pl.BlockSpec((1, tm, 1), lambda m, r, k: (r, m, 0)),
    ]

    use_residual = x_res is not None
    use_proj = proj is not None
    if use_residual:
        in_arrays.append(x_res)
        in_specs.append(
            pl.BlockSpec((tm, x_res.shape[1]), lambda m, r, k: (m, 0)))
        if use_proj:
            in_arrays.append(proj)
            in_specs.append(pl.BlockSpec(proj.shape, lambda m, r, k: (0, 0)))

    kernel = _make_hetero_conv_kernel(use_residual, use_proj, apply_relu,
                                      slice_x, tk)

    return pl.pallas_call(
        kernel,
        out_shape=jax.ShapeDtypeStruct((N, Cout), jnp.float32),
        grid_spec=pltpu.PrefetchScalarGridSpec(
            num_scalar_prefetch=0,
            grid=grid,
            in_specs=in_specs,
            out_specs=pl.BlockSpec((tm, Cout), lambda m, r, k: (m, 0)),
            scratch_shapes=[pltpu.VMEM((tm, Cin), jnp.float32)],
        ),
        compiler_params=pltpu.CompilerParams(
            # Row tiles split across v7x's two TensorCores; relation and K
            # axes are reductions into the resident output block.
            dimension_semantics=("parallel", "arbitrary", "arbitrary"),
            vmem_limit_bytes=vmem_limit,
        ),
    )(*in_arrays)


# ----------------------------------------------------------------------------
# Graph preprocessing + parameters (plain JAX glue)
# ----------------------------------------------------------------------------
def _parse_conv(conv_type):
    rel, aggr = conv_type.rsplit('_', 1)
    return rel, ('mean' if aggr == 'mean' else 'sum')


def _build_adj(edge_index, n, aggr):
    """edge_index: [2, E] int32 (row 0 = src, row 1 = dst).

    Returns (A[n, n] int8 edge counts, deg_inv[n, 1] f32)."""
    src, dst = edge_index[0], edge_index[1]
    counts = jnp.zeros((n, n), jnp.float32).at[dst, src].add(1.0)
    if aggr == 'mean':
        deg_inv = 1.0 / jnp.maximum(counts.sum(axis=1, keepdims=True), 1.0)
    else:
        deg_inv = jnp.ones((n, 1), jnp.float32)
    # int8 halves the dominant HBM stream; exact for multi-edge counts <= 127.
    a8 = jnp.clip(counts, 0.0, 127.0).astype(jnp.int8)
    return a8, deg_inv


def init_params(key):
    """Deterministic synthetic weights; only output lanes padded to 128."""
    def glorot(k, cin, cout):
        scale = jnp.sqrt(2.0 / (cin + cout)).astype(jnp.float32)
        return jax.random.normal(k, (cin, cout), jnp.float32) * scale

    def pad_out(w_real):
        return jnp.pad(w_real, ((0, 0), (0, C_PAD - w_real.shape[1])))

    params = {}

    cin, cout = HEAD_DIMS
    key, sub = jax.random.split(key)
    ks = jax.random.split(sub, len(HEAD_CONVS))
    params['head_w'] = jnp.stack([pad_out(glorot(k, cin, cout)) for k in ks], 0)

    params['layers'] = []
    for convs, (cin, cout) in zip(LAYER_CONVS, LAYER_DIMS):
        key, sub = jax.random.split(key)
        ks = jax.random.split(sub, len(convs) + 1)
        w = jnp.stack([pad_out(glorot(k, cin, cout)) for k in ks[:-1]], 0)
        proj = pad_out(glorot(ks[-1], cin, cout)) if cin != cout else None
        params['layers'].append({'w': w, 'proj': proj})
    return params


def semantic_module_forward(params, x_dict, edge_index_dict):
    x = x_dict[NODE_TYPE].astype(jnp.float32)
    n = x.shape[0]

    n_pad, tm, tk = _plan_tiles(n)
    vmem_limit = _vmem_limit_bytes()
    if n_pad != n:
        # Zero node-row padding: padded rows/cols of A are zero, deg_inv = 1,
        # so padded outputs stay exactly zero through the whole stack.
        x = jnp.pad(x, ((0, n_pad - n), (0, 0)))

    # Build each relation's adjacency once; reuse across layers.
    rel_cache = {}

    def rel_adj(conv_type):
        if conv_type not in rel_cache:
            rel, aggr = _parse_conv(conv_type)
            rel_cache[conv_type] = _build_adj(
                edge_index_dict[(NODE_TYPE, rel, NODE_TYPE)], n_pad, aggr)
        return rel_cache[conv_type]

    stack_cache = {}

    def stacked(conv_types):
        key = tuple(conv_types)
        if key not in stack_cache:
            mats, degs = zip(*[rel_adj(ct) for ct in conv_types])
            stack_cache[key] = (jnp.stack(mats, axis=0),
                                jnp.stack(degs, axis=0))
        return stack_cache[key]

    # local_head: GeneralHeteroConv([...], 6, 16) -> no residual.
    adj, deg = stacked(HEAD_CONVS)
    x = hetero_conv(adj, deg, x.astype(jnp.bfloat16), params['head_w'],
                    tm, tk, vmem_limit=vmem_limit)
    x = x[:, :HEAD_DIMS[1]]                     # real width between layers

    # Residual hetero-conv blocks; ReLU fused into the last layer's epilogue.
    n_layers = len(LAYER_CONVS)
    for i, (convs, dims, lp) in enumerate(
            zip(LAYER_CONVS, LAYER_DIMS, params['layers'])):
        cout = dims[1]
        adj, deg = stacked(convs)
        if lp['proj'] is None:
            # Identity skip: zero-pad the small residual stream to the
            # lane-padded output width so the in-kernel add is lane-dense.
            x_res = jnp.pad(x, ((0, 0), (0, C_PAD - x.shape[1])))
        else:
            x_res = x
        x = hetero_conv(adj, deg, x.astype(jnp.bfloat16), lp['w'],
                        tm, tk, x_res=x_res, proj=lp['proj'],
                        apply_relu=(i == n_layers - 1),
                        vmem_limit=vmem_limit)
        x = x[:, :cout]

    # Strip node-row padding (lane padding already sliced off above).
    return {NODE_TYPE: x[:n]}


# ----------------------------------------------------------------------------
# Example run
# ----------------------------------------------------------------------------
if __name__ == "__main__":
    key = jax.random.PRNGKey(0)

    N = 16          # number of nodes (single node type 'stroke')
    E = 24          # edges per relation

    key, kx = jax.random.split(key)
    x_dict = {NODE_TYPE: jax.random.normal(kx, (N, IN_CHANNELS), jnp.float32)}

    all_convs = list(HEAD_CONVS) + [c for convs in LAYER_CONVS for c in convs]
    all_rels = sorted({_parse_conv(ct)[0] for ct in all_convs})
    edge_index_dict = {}
    for rel in all_rels:
        key, ks, kd = jax.random.split(key, 3)
        src = jax.random.randint(ks, (E,), 0, N, jnp.int32)
        dst = jax.random.randint(kd, (E,), 0, N, jnp.int32)
        edge_index_dict[(NODE_TYPE, rel, NODE_TYPE)] = jnp.stack([src, dst])

    key, kp = jax.random.split(key)
    params = init_params(kp)

    out = semantic_module_forward(params, x_dict, edge_index_dict)
    out = jax.tree_util.tree_map(jax.block_until_ready, out)

    assert out[NODE_TYPE].shape == (N, 64)
    assert bool(jnp.all(out[NODE_TYPE] >= 0.0))
    assert bool(jnp.all(jnp.isfinite(out[NODE_TYPE])))
    print("KERNEL_OK")
</pallas_src>

<mosaic_0001>
module attributes {stable_mosaic.version = 11 : i64} {
  func.func @kernel(%arg0: i32, %arg1: i32, %arg2: i32, %arg3: memref<1x32x32xi8, #tpu.memory_space<vmem>>, %arg4: memref<32x6xbf16, #tpu.memory_space<vmem>>, %arg5: memref<2x6x128xf32, #tpu.memory_space<vmem>>, %arg6: memref<1x32x1xf32, #tpu.memory_space<vmem>>, %arg7: memref<32x128xf32, #tpu.memory_space<vmem>>, %arg8: memref<32x6xf32, #tpu.memory_space<vmem>>) attributes {dimension_semantics = [#tpu.dimension_semantics<parallel>, #tpu.dimension_semantics<arbitrary>, #tpu.dimension_semantics<arbitrary>], iteration_bounds = array<i64: 1, 2, 1>, scalar_prefetch = 0 : i64, scratch_operands = 1 : i64, tpu.core_type = #tpu.core_type<tc>, window_params = [{transform_indices = @transform_0, window_bounds = array<i64: 1, 32, 32>}, {pipeline_mode = #tpu.pipeline_mode<synchronous>, transform_indices = @transform_1, window_bounds = array<i64: 32, 6>}, {pipeline_mode = #tpu.pipeline_mode<synchronous>, transform_indices = @transform_2, window_bounds = array<i64: 2, 6, 128>}, {transform_indices = @transform_3, window_bounds = array<i64: 1, 32, 1>}, {transform_indices = @transform_4, window_bounds = array<i64: 32, 128>}]} {
    %c0_i32 = arith.constant 0 : i32
    %0 = arith.cmpi eq, %arg1, %c0_i32 : i32
    %c0_i32_0 = arith.constant 0 : i32
    %1 = arith.cmpi eq, %arg2, %c0_i32_0 : i32
    %2 = arith.andi %0, %1 : i1
    %3 = arith.extui %2 : i1 to i32
    %c0_i32_1 = arith.constant 0 : i32
    %4 = arith.cmpi ne, %3, %c0_i32_1 : i32
    scf.if %4 {
      %cst_14 = arith.constant 0.000000e+00 : f32
      %19 = vector.broadcast %cst_14 : f32 to vector<32x128xf32>
      %c0_15 = arith.constant 0 : index
      %c0_16 = arith.constant 0 : index
      %20 = vector.load %arg7[%c0_15, %c0_16] : memref<32x128xf32, #tpu.memory_space<vmem>>, vector<32x128xf32>
      tpu.vector_store %arg7[%c0_15, %c0_16], %19 {strides = array<i32>} : memref<32x128xf32, #tpu.memory_space<vmem>>, vector<32x128xf32>,
    } else {
    }
    %c0_i32_2 = arith.constant 0 : i32
    %5 = arith.cmpi eq, %arg2, %c0_i32_2 : i32
    %6 = arith.extui %5 : i1 to i32
    %c0_i32_3 = arith.constant 0 : i32
    %7 = arith.cmpi ne, %6, %c0_i32_3 : i32
    scf.if %7 {
      %cst_14 = arith.constant 0.000000e+00 : f32
      %19 = vector.broadcast %cst_14 : f32 to vector<32x6xf32>
      %c0_15 = arith.constant 0 : index
      %c0_16 = arith.constant 0 : index
      %20 = vector.load %arg8[%c0_15, %c0_16] : memref<32x6xf32, #tpu.memory_space<vmem>>, vector<32x6xf32>
      tpu.vector_store %arg8[%c0_15, %c0_16], %19 {strides = array<i32>} : memref<32x6xf32, #tpu.memory_space<vmem>>, vector<32x6xf32>,
    } else {
    }
    %c0 = arith.constant 0 : index
    %c0_4 = arith.constant 0 : index
    %c0_5 = arith.constant 0 : index
    %8 = vector.load %arg3[%c0, %c0_4, %c0_5] : memref<1x32x32xi8, #tpu.memory_space<vmem>>, vector<1x32x32xi8>
    %9 = vector.shape_cast %8 : vector<1x32x32xi8> to vector<32x32xi8>
    %10 = arith.sitofp %9 : vector<32x32xi8> to vector<32x32xbf16>
    %c0_6 = arith.constant 0 : index
    %c0_7 = arith.constant 0 : index
    %11 = vector.load %arg4[%c0_6, %c0_7] : memref<32x6xbf16, #tpu.memory_space<vmem>>, vector<32x6xbf16>
    %c0_8 = arith.constant 0 : index
    %c0_9 = arith.constant 0 : index
    %12 = vector.load %arg8[%c0_8, %c0_9] : memref<32x6xf32, #tpu.memory_space<vmem>>, vector<32x6xf32>
    %cst = arith.constant dense<0.000000e+00> : vector<32x6xf32>
    %13 = tpu.matmul %10, %11, %cst {dimension_numbers = #tpu.dot_dimension_numbers<[1], [0], [0], [1], [0, 0, 1, 1], [], []>} : vector<32x32xbf16>, vector<32x6xbf16>, vector<32x6xf32> -> vector<32x6xf32>
    %14 = arith.addf %12, %13 : vector<32x6xf32>
    %c0_10 = arith.constant 0 : index
    %c0_11 = arith.constant 0 : index
    %15 = vector.load %arg8[%c0_10, %c0_11] : memref<32x6xf32, #tpu.memory_space<vmem>>, vector<32x6xf32>
    tpu.vector_store %arg8[%c0_10, %c0_11], %14 {strides = array<i32>} : memref<32x6xf32, #tpu.memory_space<vmem>>, vector<32x6xf32>,
    %c0_i32_12 = arith.constant 0 : i32
    %16 = arith.cmpi eq, %arg2, %c0_i32_12 : i32
    %17 = arith.extui %16 : i1 to i32
    %c0_i32_13 = arith.constant 0 : i32
    %18 = arith.cmpi ne, %17, %c0_i32_13 : i32
    scf.if %18 {
      %c0_14 = arith.constant 0 : index
      %c0_15 = arith.constant 0 : index
      %19 = vector.load %arg8[%c0_14, %c0_15] : memref<32x6xf32, #tpu.memory_space<vmem>>, vector<32x6xf32>
      %c0_16 = arith.constant 0 : index
      %c0_17 = arith.constant 0 : index
      %c0_18 = arith.constant 0 : index
      %20 = vector.load %arg6[%c0_16, %c0_17, %c0_18] : memref<1x32x1xf32, #tpu.memory_space<vmem>>, vector<1x32x1xf32>
      %21 = vector.shape_cast %20 : vector<1x32x1xf32> to vector<32x1xf32>
      %22 = vector.broadcast %21 : vector<32x1xf32> to vector<32x6xf32>
      %23 = arith.mulf %19, %22 : vector<32x6xf32>
      %24 = arith.index_cast %arg1 : i32 to index
      %c0_19 = arith.constant 0 : index
      %c0_20 = arith.constant 0 : index
      %25 = vector.load %arg5[%24, %c0_19, %c0_20] : memref<2x6x128xf32, #tpu.memory_space<vmem>>, vector<1x6x128xf32>
      %26 = vector.shape_cast %25 : vector<1x6x128xf32> to vector<6x128xf32>
      %cst_21 = arith.constant dense<0.000000e+00> : vector<32x128xf32>
      %27 = tpu.matmul %23, %26, %cst_21 {dimension_numbers = #tpu.dot_dimension_numbers<[1], [0], [0], [1], [0, 0, 1, 1], [], []>} : vector<32x6xf32>, vector<6x128xf32>, vector<32x128xf32> -> vector<32x128xf32>
      %c1_i32 = arith.constant 1 : i32
      %28 = arith.cmpi ne, %arg1, %c1_i32 : i32
      %29 = arith.extui %28 : i1 to i32
      %c0_i32_22 = arith.constant 0 : i32
      %30 = arith.cmpi ne, %29, %c0_i32_22 : i32
      scf.if %30 {
        %c0_25 = arith.constant 0 : index
        %c0_26 = arith.constant 0 : index
        %34 = vector.load %arg7[%c0_25, %c0_26] : memref<32x128xf32, #tpu.memory_space<vmem>>, vector<32x128xf32>
        %35 = arith.addf %34, %27 : vector<32x128xf32>
        %c0_27 = arith.constant 0 : index
        %c0_28 = arith.constant 0 : index
        %36 = vector.load %arg7[%c0_27, %c0_28] : memref<32x128xf32, #tpu.memory_space<vmem>>, vector<32x128xf32>
        tpu.vector_store %arg7[%c0_27, %c0_28], %35 {strides = array<i32>} : memref<32x128xf32, #tpu.memory_space<vmem>>, vector<32x128xf32>,
      } else {
      }
      %c1_i32_23 = arith.constant 1 : i32
      %31 = arith.cmpi eq, %arg1, %c1_i32_23 : i32
      %32 = arith.extui %31 : i1 to i32
      %c0_i32_24 = arith.constant 0 : i32
      %33 = arith.cmpi ne, %32, %c0_i32_24 : i32
      scf.if %33 {
        %c0_25 = arith.constant 0 : index
        %c0_26 = arith.constant 0 : index
        %34 = vector.load %arg7[%c0_25, %c0_26] : memref<32x128xf32, #tpu.memory_space<vmem>>, vector<32x128xf32>
        %35 = arith.addf %34, %27 : vector<32x128xf32>
        %c0_27 = arith.constant 0 : index
        %c0_28 = arith.constant 0 : index
        %36 = vector.load %arg7[%c0_27, %c0_28] : memref<32x128xf32, #tpu.memory_space<vmem>>, vector<32x128xf32>
        tpu.vector_store %arg7[%c0_27, %c0_28], %35 {strides = array<i32>} : memref<32x128xf32, #tpu.memory_space<vmem>>, vector<32x128xf32>,
      } else {
      }
    } else {
    }
    return
  }
  func.func @transform_0(%arg0: i32, %arg1: i32, %arg2: i32) -> (i32, i32, i32) {
    %c0_i32 = arith.constant 0 : i32
    return %arg1, %arg0, %arg2 : i32, i32, i32
  }
  func.func @transform_1(%arg0: i32, %arg1: i32, %arg2: i32) -> (i32, i32) {
    %c0_i32 = arith.constant 0 : i32
    %c0_i32_0 = arith.constant 0 : i32
    %c0_i32_1 = arith.constant 0 : i32
    return %c0_i32, %c0_i32_0 : i32, i32
  }
  func.func @transform_2(%arg0: i32, %arg1: i32, %arg2: i32) -> (i32, i32, i32) {
    %c0_i32 = arith.constant 0 : i32
    %c0_i32_0 = arith.constant 0 : i32
    %c0_i32_1 = arith.constant 0 : i32
    %c0_i32_2 = arith.constant 0 : i32
    return %c0_i32, %c0_i32_0, %c0_i32_1 : i32, i32, i32
  }
  func.func @transform_3(%arg0: i32, %arg1: i32, %arg2: i32) -> (i32, i32, i32) {
    %c0_i32 = arith.constant 0 : i32
    %c0_i32_0 = arith.constant 0 : i32
    return %arg1, %arg0, %c0_i32 : i32, i32, i32
  }
  func.func @transform_4(%arg0: i32, %arg1: i32, %arg2: i32) -> (i32, i32) {
    %c0_i32 = arith.constant 0 : i32
    %c0_i32_0 = arith.constant 0 : i32
    return %arg0, %c0_i32 : i32, i32
  }
}

</mosaic_0001>

<bundles_post_ra>
// kernel: tpu_custom_call.1
= control target key start
LH: loop header
LB: loop body
LE: loop exit
PB: predicated region body
PF: predicated region fallthrough
CT: control target
= control target key end

     0   :  { %9 = vsyncpa [#allocation4], 0  ;;  %s719_s15 = smov 0   ;;  %s721_s16 = smov 0   ;;  %s793_s0 = inlined_call_operand.vmem [shape: s8[2,32,32], index: 0, kind: input, shape index: {}]   ;;  %s794_s1 = inlined_call_operand.vmem [shape: bf16[32,6], index: 1, kind: input, shape index: {}]   ;;  %s795_s2 = inlined_call_operand.vmem [shape: f32[2,6,128], index: 2, kind: input, shape index: {}]   ;;  %s796_s3 = inlined_call_operand.vmem [shape: f32[2,32,1], index: 3, kind: input, shape index: {}]   ;;  %s797_s4 = inlined_call_operand.hbm [shape: f32[32,128], index: 4, kind: output, shape index: {}]  }
   0x1   :  { %s723_s17 = smov 0  }
   0x2 LB: > { %s557_s18 = sadd.s32 4294967295, %s686_s17   ;;  %s30_s19 = sadd.s32 1, %s682_s16  ;;  %s686_s17 = sphi %s723_s17, %s15_s17   ;;  %s682_s16 = sphi %s721_s16, %s799_s16   ;;  %s678_s15 = sphi %s719_s15, %s798_s15  }
   0x3   : > { %p32_p0 = scmp.ge.s32.totalorder %s30_s19, 2  ;;  %p560_p1 = scmp.ge.s32.totalorder %s686_s17, 1 }
   0x4   : > { %p208_p2 = scmp.lt.s32.totalorder %s686_s17, 3 }
   0x5   : > { %s801_s19 = smov (%p32_p0, %s30_s19), 0 }
   0x6   : > { %p209_p3 = pnand %p560_p1, %p208_p2 }
   0x7   : > { %p243_p4 = scmp.lt.s32.totalorder (!%p209_p3), %s678_s15, 1  ;;  %p265_p5 = scmp.eq.s32.totalorder (!%p209_p3), %s678_s15, 0 }
   0x8   : > { %212 = sbr.rel (%p209_p3) target bundleno = 349 (0x15d), region = 36 }
   0xd   : > { %s244_s20 = scalar_select %p243_p4, %s678_s15, 1  ;;  %v688_v0 = vmov (%p265_p5), 0.0  }
   0xe   : > { %270 = sbr.rel (!%p265_p5) target bundleno = 19 (0x13), region = 40  ;;  %271 = vst [vmem:[#allocation3] sm:$0xff] (%p265_p5), %v688_v0 }
   0xf   : > { %s561_s21 = sshll.u32 %s244_s20, 3  ;;  %s587_s22 = sshll.u32 %s244_s20, 5  ;;  %272 = vst [vmem:[#allocation3 + $0x8] sm:$0xff] (%p265_p5), %v688_v0 }
  0x10   : > { %s252_s25 = scalar_lea.vmem %s793_s0, %s561_s21  ;;  %s749_s28 = scalar_lea.vmem %s796_s3, %s587_s22  ;;  %273 = vst [vmem:[#allocation3 + $0x10] sm:$0xff] (%p265_p5), %v688_v0 }
  0x11   : > { %274 = vst [vmem:[#allocation3 + $0x18] sm:$0xff] (%p265_p5), %v688_v0 }
  0x13 PF: > { %v590_v1 = vld [vmem:[%s794_s1 + $0x8] sm:$0xff]  ;;  %v283_v2 = vld [vmem:[%s252_s25] sm:$0xff]  ;;  %vm278_vm0 = vcmask 48128   ;;  %v689_v7 = vmov 0   ;;  %v359_v8 = vld [vmem:[%s749_s28 + $0x18] sm:$0xff]  ;;  %v690_v15 = vmov 0.0  }
  0x14   : > { %v284_v3 = vunpack.c.0.s8 %v283_v2  ;;  %v285_v4 = vunpack.c.1.s8 %v283_v2  ;;  %v286_v5 = vunpack.c.2.s8 %v283_v2  ;;  %v287_v6 = vunpack.c.3.s8 %v283_v2  ;;  %631 = vset.pattern.permute.xlu1 %v689_v7  ;;  %630 = vset.pattern.permute.xlu0 %v689_v7  ;;  %v357_v9 = vld [vmem:[%s749_s28 + $0x8] sm:$0xff]  ;;  %v589_v10 = vld [vmem:[%s794_s1] sm:$0xff]  ;;  %279 = vst.msk [vmem:[#allocation2] sm:$0xff] %vm278_vm0, %v690_v15  ;;  %v358_v19 = vld [vmem:[%s749_s28 + $0x10] sm:$0xff]  ;;  %s575_s7 = sshll.u32 %s678_s15, 3  ;;  %p581_p6 = scmp.eq.s32.totalorder %s678_s15, 1 }
  0x15   : > { %327 = vmatpush.bf16.msra.mxu0 %v590_v1  ;;  %591 = vmatpush.bf16.msra.mxu2 %v590_v1  ;;  %280 = vst.msk [vmem:[#allocation2 + $0x8] sm:$0xff] %vm278_vm0, %v690_v15  ;;  %vm314_vm1 = vcmask 261120   ;;  %v356_v18 = vld [vmem:[%s749_s28] sm:$0xff]  ;;  %s385_s10 = scalar_lea.vmem %s795_s2, %s575_s7  ;;  %vm399_vm2 = vcmask 1045504  }
  0x16   : > { %v288_v11 = vcvt.s32.f32 %v284_v3  ;;  %v289_v12 = vcvt.s32.f32 %v285_v4  ;;  %v290_v13 = vcvt.s32.f32 %v286_v5  ;;  %v291_v14 = vcvt.s32.f32 %v287_v6  ;;  %377 = vperm.xlu1 %631, %v359_v8   ;;  %367 = vperm.xlu0 %630, %v357_v9   ;;  %281 = vst.msk [vmem:[#allocation2 + $0x10] sm:$0xff] %vm278_vm0, %v690_v15  ;;  %v386_v20 = vld [vmem:[%s385_s10] sm:$0x3f] }
  0x17   : > { %282 = vst.msk [vmem:[#allocation2 + $0x18] sm:$0xff] %vm278_vm0, %v690_v15  ;;  %576 = vmatpush.msk.msra.mxu1 %vm399_vm2, %v386_v20  ;;  %593 = vmatpush.msk.msra.mxu3 %vm399_vm2, %v386_v20 }
  0x18   : > { %v292_v16 = vpack.c.bf16 %v289_v12, %v288_v11  ;;  %v293_v17 = vpack.c.bf16 %v291_v14, %v290_v13 }
  0x19   : > { %328 = vmatpush.bf16.msra.mxu0 %v589_v10  ;;  %592 = vmatpush.bf16.msra.mxu2 %v589_v10 }
  0x1b   : > { %v298_v21 = vld [vmem:[#allocation2] sm:$0xff] }
  0x1c   : > { %573 = vmatmul.msk.bf16.vlgmr.msra.gmra.mxu0 %vm314_vm1, %v292_v16  ;;  %574 = vmatmul.msk.bf16.vlgmr.msra.gmra.mxu2 %vm314_vm1, %v293_v17  ;;  %v299_v26 = vld [vmem:[#allocation2 + $0x8] sm:$0xff] }
  0x1d   : > { %v300_v25 = vld [vmem:[#allocation2 + $0x10] sm:$0xff] }
  0x1e   : > { %362 = vperm.xlu1 %631, %v356_v18   ;;  %372 = vperm.xlu0 %630, %v358_v19   ;;  %v301_v34 = vld [vmem:[#allocation2 + $0x18] sm:$0xff] }
  0x88   : > { %v378_v22 = vpop.permute.xlu1 %377  ;;  %v368_v35 = vpop.permute.xlu0 %367 }
  0x90   : > { %v363_v30 = vpop.permute.xlu1 %362  ;;  %v373_v40 = vpop.permute.xlu0 %372 }
  0x99   : > { %v330_v23 = vpop.f32.mrf.mxu0 }
  0x9a   : > { %v340_v24 = vadd.f32 %v330_v23, %v298_v21 }
  0x9c   : > { %345 = vst.msk [vmem:[#allocation2] sm:$0xff] %vm278_vm0, %v340_v24 }
  0x9f   : > { %v335_v27 = vpop.f32.mrf.mxu2 }
  0xa0   : > { %v342_v28 = vadd.f32 %v335_v27, %v300_v25 }
  0xa1   : > { %v332_v29 = vpop.f32.mrf.mxu0 }
  0xa2   : > { %v341_v31 = vadd.f32 %v332_v29, %v299_v26  ;;  %347 = vst.msk [vmem:[#allocation2 + $0x10] sm:$0xff] %vm278_vm0, %v342_v28 }
  0xa3   : > { %v352_v32 = vld [vmem:[#allocation2] sm:$0xff] }
  0xa4   : > { %346 = vst.msk [vmem:[#allocation2 + $0x8] sm:$0xff] %vm278_vm0, %v341_v31  ;;  %v380_v33 = vmul.f32 %v363_v30, %v352_v32 }
  0xa6   : > { %577 = vmatmul.msk.f32.vlgmr.msra.gmra.mxu1 %vm278_vm0, %v380_v33 }
  0xa7   : > { %v337_v36 = vpop.f32.mrf.mxu2 }
  0xa8   : > { %v343_v37 = vadd.f32 %v337_v36, %v301_v34 }
  0xa9   : > { %v354_v41 = vld [vmem:[#allocation2 + $0x10] sm:$0xff] }
  0xaa   : > { %348 = vst.msk [vmem:[#allocation2 + $0x18] sm:$0xff] %vm278_vm0, %v343_v37  ;;  %v382_v42 = vmul.f32 %v373_v40, %v354_v41 }
  0xab   : > { %v353_v38 = vld [vmem:[#allocation2 + $0x8] sm:$0xff] }
  0xac   : > { %v381_v39 = vmul.f32 %v368_v35, %v353_v38 }
  0xae   : > { %578 = vmatmul.msk.f32.vlgmr.msra.gmra.mxu3 %vm278_vm0, %v381_v39 }
  0xb1   : > { %v355_v43 = vld [vmem:[#allocation2 + $0x18] sm:$0xff] }
  0xb2   : > { %v383_v44 = vmul.f32 %v378_v22, %v355_v43 }
  0xb6   : > { %579 = vmatmul.msk.f32.gmra.mxu3 %vm278_vm0, %v382_v42 }
  0xbe   : > { %580 = vmatmul.msk.f32.gmra.mxu3 %vm278_vm0, %v383_v44 }
 0x123   : > { %v420_v45 = vpop.f32.mrf.mxu1 }
 0x131   : > { %v423_v46 = vpop.f32.mrf.mxu3 }
 0x139   : > { %v426_v47 = vpop.f32.mrf.mxu3 }
 0x13d   : > { %435 = sbr.rel (%p581_p6) target bundleno = 329 (0x149), region = 52 }
 0x141   : > { %v429_v48 = vpop.f32.mrf.mxu3 }
 0x142   : > { %v436_v49 = vld [vmem:[#allocation3] sm:$0xff]  ;;  %v437_v50 = vld [vmem:[#allocation3 + $0x8] sm:$0xff]  ;;  %v438_v51 = vld [vmem:[#allocation3 + $0x10] sm:$0xff] }
 0x143   : > { %v440_v52 = vadd.f32 %v436_v49, %v420_v45  ;;  %v441_v53 = vadd.f32 %v437_v50, %v423_v46  ;;  %v442_v54 = vadd.f32 %v438_v51, %v426_v47  ;;  %v439_v55 = vld [vmem:[#allocation3 + $0x18] sm:$0xff] }
 0x144   : > { %v443_v56 = vadd.f32 %v439_v55, %v429_v48 }
 0x145   : > { %444 = vst [vmem:[#allocation3] sm:$0xff] %v440_v52 }
 0x146   : > { %445 = vst [vmem:[#allocation3 + $0x8] sm:$0xff] %v441_v53 }
 0x147   : > { %446 = vst [vmem:[#allocation3 + $0x10] sm:$0xff] %v442_v54 }
 0x148   : > { %447 = vst [vmem:[#allocation3 + $0x18] sm:$0xff] %v443_v56 }
 0x149 PF: > { %p582_p7 = scmp.ne.s32.totalorder %s678_s15, 1 }
 0x14b   : > { %451 = sbr.rel (%p582_p7) target bundleno = 343 (0x157), region = 56 }
 0x150   : > { %v452_v57 = vld [vmem:[#allocation3] sm:$0xff]  ;;  %v453_v58 = vld [vmem:[#allocation3 + $0x8] sm:$0xff]  ;;  %v454_v59 = vld [vmem:[#allocation3 + $0x10] sm:$0xff] }
 0x151   : > { %v456_v60 = vadd.f32 %v452_v57, %v420_v45  ;;  %v457_v61 = vadd.f32 %v453_v58, %v423_v46  ;;  %v458_v62 = vadd.f32 %v454_v59, %v426_v47  ;;  %v455_v63 = vld [vmem:[#allocation3 + $0x18] sm:$0xff] }
 0x152   : > { %v459_v0 = vadd.f32 %v455_v63, %v429_v48 }
 0x153   : > { %460 = vst [vmem:[#allocation3] sm:$0xff] %v456_v60 }
 0x154   : > { %461 = vst [vmem:[#allocation3 + $0x8] sm:$0xff] %v457_v61 }
 0x155   : > { %462 = vst [vmem:[#allocation3 + $0x10] sm:$0xff] %v458_v62 }
 0x156   : > { %463 = vst [vmem:[#allocation3 + $0x18] sm:$0xff] %v459_v0 }
 0x157 PF: > { %p598_p8 = scmp.eq.s32.totalorder %s557_s18, 1  ;;  %s474_s13 = sshll.u32 %s797_s4, 4  ;;  %s475_s13 = int_to_ptr.hbm [resolvable:$true] %s474_s13 }
 0x158   : > { %s691_s14 = smov [#allocation3]   ;;  %s692_s20 = smov 128  }
 0x159   : > { %s472_s15 = sshll.u32 %s691_s14, 4  ;;  %s693_s21 = smov 8   ;;  %s473_s15 = int_to_ptr.vmem [resolvable:$true] %s472_s15 }
 0x15a   : > { %595 = dma.vmem_to_hbm [thread:$0]  (%p598_p8), %s473_s15, 512, %s475_s13, [#allocation4], %s692_s20, %s692_s20, %s693_s21  }
 0x15b   : > { %673 = dma.done.wait (%p598_p8), [#allocation4], 512  }
 0x15c   : > { %675 = vsyncadd (%p598_p8), [#allocation4], 4294966784 }
 0x15d PF: > { %s15_s17 = sadd.s32 1, %s686_s17   ;;  %s798_s15 = smov %s682_s16 }
 0x15e   : > { %p12_p9 = scmp.ge.s32.totalorder %s15_s17, 4   ;;  %s799_s16 = smov %s801_s19 }
 0x160   :  { %14 = sbr.rel (!%p12_p9) target bundleno = 2 (0x2), region = 88 }
 0x165   :  { %491 = vsyncpa [#allocation4], 1 }
 0x166   :  { %493 = vsyncpa [#allocation4 + $0x1], 1 }

</bundles_post_ra>
